<compile_context>
chip_gen: v7x
topology: tpu7x:2x2x1
jax: 0.10.0
libtpu: 0.0.40
codegen_flags: <defaults>
</compile_context>

<pallas_src>
import functools
import math

import jax
import jax.numpy as jnp
import numpy as np
from jax.experimental import pallas as pl
from jax.experimental.pallas import tpu as pltpu


# ------------------------------ Pallas kernel --------------------------------

def _deconv_bn_relu_kernel(cur_ref, nxt_ref, w_ref, b_ref, o_ref, *, k, wp, strip):
    # cur_ref: (1, Cin_pad, strip)      current strip of the dilated+padded input
    #                                   (flat row-major spatial in LANES)
    # nxt_ref: (1, Cin_pad, strip)      next strip (supplies the (k-1)*wp + k-1 halo)
    # w_ref:   (k*k, Cout_pad, Cin_pad) BN-folded, spatially flipped ConvTranspose taps
    # b_ref:   (Cout_pad, 1) f32        BN-folded bias
    # o_ref:   (1, Cout_pad, strip)     one output row strip, channel-major, spatial in lanes
    xw = jnp.concatenate([cur_ref[0], nxt_ref[0]], axis=-1)      # (Cin_pad, 2*strip)
    w = w_ref[...]                                               # (k*k, Cout_pad, Cin_pad)

    # k*k thin MXU matmuls (K = Cin_pad) accumulated in f32; all tap offsets are static.
    acc = None
    for dh in range(k):
        for dw in range(k):
            off = dh * wp + dw                                   # static python int
            part = jnp.dot(w[dh * k + dw], xw[:, off:off + strip],
                           preferred_element_type=jnp.float32)   # (Cout_pad, strip) f32
            acc = part if acc is None else acc + part

    # Fused bias (BN folded) + ReLU epilogue in f32, lane-dense store.
    o_ref[0] = jnp.maximum(acc + b_ref[...], 0.0).astype(o_ref.dtype)


# ------------------------------ tiling planner --------------------------------

def _round_up(x, m):
    return -(-x // m) * m


def _plan_tiles(h_out, w_need, k, *, target_strips=8, min_strip=256, max_strip=4096):
    """Pick (wp, tile_h, n_strips) with strip = tile_h*wp a multiple of 128 (unmasked
    stores, (8,128)-tiled blocks), tile_h >= k (next-strip halo covers all taps), and a
    useful number of row strips per image without excessive junk-column padding."""
    cands = []
    for align in (8, 16, 32, 64, 128):
        wp = _round_up(w_need, align)
        m = 128 // math.gcd(wp, 128)                 # tile_h granularity for strip%128==0
        th_min = _round_up(max(k, -(-min_strip // wp)), m)
        th_cap = max(th_min, (max_strip // wp) // m * m)
        th = _round_up(max(1, -(-h_out // target_strips)), m)
        th = min(max(th, th_min), th_cap)
        n = -(-h_out // th)
        cands.append((n * th * wp, n, wp, th))       # (padded outputs per image/channel,...)
    min_waste = min(c[0] for c in cands)
    # Most strips (pipelining / megacore) within a 30% waste budget, tie-break least waste.
    waste, n, wp, th = max((c for c in cands if c[0] <= 1.3 * min_waste),
                           key=lambda c: (c[1], -c[0]))
    return wp, th, n


# ------------------------------ host-side wrapper -----------------------------

def deconv2d_bn_relu(params, x_nchw, *, stride, padding, eps=1e-5,
                     compute_dtype=jnp.float32, out_dtype=None):
    """ConvTranspose2d(k,k,stride,padding,bias=True) + BatchNorm2d(eval) + ReLU, NCHW."""
    if out_dtype is None:
        out_dtype = compute_dtype
    w_t = params["w"]                                  # (Cin, Cout, k, k)  PyTorch layout
    b, gamma, beta = params["b"], params["gamma"], params["beta"]
    mean, var = params["mean"], params["var"]

    N, Cin, H, W = x_nchw.shape
    Cin_w, Cout, k, k2 = w_t.shape
    assert Cin_w == Cin and k == k2
    s, p = int(stride), int(padding)
    g = k - 1 - p
    H_out = (H - 1) * s - 2 * p + k
    W_out = (W - 1) * s - 2 * p + k
    assert H_out > 0 and W_out > 0

    cin_p = _round_up(Cin, 8)
    cout_p = _round_up(Cout, 8)

    # ---- fold BatchNorm (inference) into weights / bias ---------------------------------
    scale = gamma / jnp.sqrt(var + eps)                                      # (Cout,)
    # ConvTranspose == stride-1 correlation of the zero-dilated, (k-1-p)-padded input with
    # the io-swapped, spatially flipped kernel.
    w_c = jnp.transpose(w_t, (2, 3, 1, 0))[::-1, ::-1]                       # (k,k,Cout,Cin)
    w_c = w_c * scale[None, None, :, None]
    w_taps = (jnp.zeros((k, k, cout_p, cin_p), compute_dtype)
              .at[:, :, :Cout, :Cin].set(w_c.astype(compute_dtype))
              .reshape(k * k, cout_p, cin_p))
    b_f = (jnp.zeros((cout_p,), jnp.float32)
           .at[:Cout].set((b - mean) * scale + beta))[:, None]               # (Cout_pad,1) f32

    # ---- tiling plan ---------------------------------------------------------------------
    wp, tile_h, n_strips = _plan_tiles(H_out, W_out + k - 1, k)
    strip = tile_h * wp                                # multiple of 128
    H_pad = n_strips * tile_h
    rows = H_pad + tile_h                              # extra strip so the "next" halo block exists

    # ---- dilate + pad + channel-pad in ONE lax.pad, keep channel-major, flatten spatial ---
    dil_h, dil_w = (H - 1) * s + 1, (W - 1) * s + 1
    xz = x_nchw.astype(compute_dtype)
    pad_cfg = ((0, 0, 0), (0, cin_p - Cin, 0),
               (g, rows - dil_h - g, s - 1), (g, wp - dil_w - g, s - 1))
    x_pad = jax.lax.pad(xz, jnp.zeros((), compute_dtype), pad_cfg)           # (N,Cin_p,rows,wp)
    x_flat = x_pad.reshape(N, cin_p, rows * wp)        # (N, Cin_p, (n_strips+1)*strip)

    kern = functools.partial(_deconv_bn_relu_kernel, k=k, wp=wp, strip=strip)
    out_flat = pl.pallas_call(
        kern,
        grid=(N, n_strips),
        in_specs=[
            pl.BlockSpec((1, cin_p, strip), lambda n, r: (n, 0, r)),         # current strip
            pl.BlockSpec((1, cin_p, strip), lambda n, r: (n, 0, r + 1)),     # halo (next strip)
            pl.BlockSpec((k * k, cout_p, cin_p), lambda n, r: (0, 0, 0)),    # folded weights
            pl.BlockSpec((cout_p, 1), lambda n, r: (0, 0)),                  # folded bias
        ],
        out_specs=pl.BlockSpec((1, cout_p, strip), lambda n, r: (n, 0, r)),
        out_shape=jax.ShapeDtypeStruct((N, cout_p, H_pad * wp), out_dtype),
        compiler_params=pltpu.CompilerParams(
            dimension_semantics=("parallel", "parallel"),
            vmem_limit_bytes=48 * 1024 * 1024,
        ),
    )(x_flat, x_flat, w_taps, b_f)

    # Drop junk halo columns / pad rows / pad channels.  Output is already channel-major
    # (NCHW) -> cheap strided slice, NO transpose round trip.
    out = out_flat.reshape(N, cout_p, H_pad, wp)[:, :Cout, :H_out, :W_out]
    return out


# --------------------------------- params / reference -------------------------

def init_deconv_bn_relu_params(key, in_channels, n_filters, k_size):
    kw, kb, kg, kbe, km, kv = jax.random.split(key, 6)
    bound = 1.0 / np.sqrt(in_channels * k_size * k_size)
    return dict(
        w=jax.random.uniform(kw, (in_channels, n_filters, k_size, k_size),
                             jnp.float32, -bound, bound),
        b=jax.random.uniform(kb, (n_filters,), jnp.float32, -bound, bound),
        # randomized BN params / running stats to exercise the folding
        gamma=jax.random.uniform(kg, (n_filters,), jnp.float32, 0.5, 1.5),
        beta=0.1 * jax.random.normal(kbe, (n_filters,), jnp.float32),
        mean=0.1 * jax.random.normal(km, (n_filters,), jnp.float32),
        var=jax.random.uniform(kv, (n_filters,), jnp.float32, 0.5, 1.5),
    )


def _reference(params, x, *, stride, padding, eps=1e-5):
    w_t = params["w"]
    k = w_t.shape[2]
    s, p = stride, padding
    w_conv = jnp.flip(jnp.transpose(w_t, (1, 0, 2, 3)), axis=(2, 3))         # (Cout,Cin,k,k)
    y = jax.lax.conv_general_dilated(
        x, w_conv, window_strides=(1, 1),
        padding=[(k - 1 - p, k - 1 - p)] * 2,
        lhs_dilation=(s, s),
        dimension_numbers=("NCHW", "OIHW", "NCHW"),
        precision=jax.lax.Precision.HIGHEST)
    y = y + params["b"][None, :, None, None]
    scale = params["gamma"] / jnp.sqrt(params["var"] + eps)
    shift = params["beta"] - params["mean"] * scale
    y = y * scale[None, :, None, None] + shift[None, :, None, None]
    return jnp.maximum(y, 0.0)


# ------------------------------------- main ------------------------------------

if __name__ == "__main__":
    key = jax.random.PRNGKey(0)
    kx, kp1, kp2 = jax.random.split(key, 3)

    N, Cin, H, W = 2, 4, 16, 16
    Cout = 8
    x = jax.random.normal(kx, (N, Cin, H, W), jnp.float32)

    # Config A: kernel 3, stride 2, padding 1 (typical ICNet/SegNet upsample block), f32.
    pA = init_deconv_bn_relu_params(kp1, Cin, Cout, 3)
    fA = jax.jit(functools.partial(deconv2d_bn_relu, stride=2, padding=1))
    outA = jax.block_until_ready(fA(pA, x))
    refA = _reference(pA, x, stride=2, padding=1)
    assert outA.shape == (N, Cout, 31, 31)
    np.testing.assert_allclose(np.asarray(outA), np.asarray(refA), rtol=2e-4, atol=2e-4)

    # Config B: kernel 2, stride 2, padding 0 — f32 (exact) and bf16 (perf) paths.
    pB = init_deconv_bn_relu_params(kp2, Cin, Cout, 2)
    fB = jax.jit(functools.partial(deconv2d_bn_relu, stride=2, padding=0))
    outB = jax.block_until_ready(fB(pB, x))
    refB = _reference(pB, x, stride=2, padding=0)
    assert outB.shape == (N, Cout, 32, 32)
    np.testing.assert_allclose(np.asarray(outB), np.asarray(refB), rtol=2e-4, atol=2e-4)

    fB16 = jax.jit(functools.partial(deconv2d_bn_relu, stride=2, padding=0,
                                     compute_dtype=jnp.bfloat16))
    outB16 = jax.block_until_ready(fB16(pB, x)).astype(jnp.float32)
    rel = (np.linalg.norm(np.asarray(outB16) - np.asarray(refB))
           / max(np.linalg.norm(np.asarray(refB)), 1e-6))
    assert rel < 2e-2, f"bf16 path deviates too much: {rel}"

    print("KERNEL_OK")
</pallas_src>

<mosaic_0001>
module attributes {stable_mosaic.version = 11 : i64} {
  func.func @_deconv_bn_relu_kernel(%arg0: i32, %arg1: i32, %arg2: memref<1x8x384xf32, #tpu.memory_space<vmem>>, %arg3: memref<1x8x384xf32, #tpu.memory_space<vmem>>, %arg4: memref<9x8x8xf32, #tpu.memory_space<vmem>>, %arg5: memref<8x1xf32, #tpu.memory_space<vmem>>, %arg6: memref<1x8x384xf32, #tpu.memory_space<vmem>>) attributes {dimension_semantics = [#tpu.dimension_semantics<parallel>, #tpu.dimension_semantics<parallel>], iteration_bounds = array<i64: 2, 4>, scalar_prefetch = 0 : i64, scratch_operands = 0 : i64, tpu.core_type = #tpu.core_type<tc>, window_params = [{transform_indices = @transform_0, window_bounds = array<i64: 1, 8, 384>}, {transform_indices = @transform_1, window_bounds = array<i64: 1, 8, 384>}, {pipeline_mode = #tpu.pipeline_mode<synchronous>, transform_indices = @transform_2, window_bounds = array<i64: 9, 8, 8>}, {pipeline_mode = #tpu.pipeline_mode<synchronous>, transform_indices = @transform_3, window_bounds = array<i64: 8, 1>}, {transform_indices = @transform_4, window_bounds = array<i64: 1, 8, 384>}]} {
    %c0 = arith.constant 0 : index
    %c0_0 = arith.constant 0 : index
    %c0_1 = arith.constant 0 : index
    %0 = vector.load %arg2[%c0, %c0_0, %c0_1] : memref<1x8x384xf32, #tpu.memory_space<vmem>>, vector<1x8x384xf32>
    %1 = vector.shape_cast %0 : vector<1x8x384xf32> to vector<8x384xf32>
    %c0_2 = arith.constant 0 : index
    %c0_3 = arith.constant 0 : index
    %c0_4 = arith.constant 0 : index
    %2 = vector.load %arg3[%c0_2, %c0_3, %c0_4] : memref<1x8x384xf32, #tpu.memory_space<vmem>>, vector<1x8x384xf32>
    %3 = vector.shape_cast %2 : vector<1x8x384xf32> to vector<8x384xf32>
    %4 = tpu.concatenate %1, %3 in 1 : vector<8x384xf32>, vector<8x384xf32> -> vector<8x768xf32>
    %c0_5 = arith.constant 0 : index
    %c0_6 = arith.constant 0 : index
    %c0_7 = arith.constant 0 : index
    %5 = vector.load %arg4[%c0_5, %c0_6, %c0_7] : memref<9x8x8xf32, #tpu.memory_space<vmem>>, vector<9x8x8xf32>
    %6 = vector.extract_strided_slice %5 {offsets = [0, 0, 0], sizes = [1, 8, 8], strides = [1, 1, 1]} : vector<9x8x8xf32> to vector<1x8x8xf32>
    %7 = vector.shape_cast %6 : vector<1x8x8xf32> to vector<8x8xf32>
    %8 = vector.extract_strided_slice %4 {offsets = [0, 0], sizes = [8, 384], strides = [1, 1]} : vector<8x768xf32> to vector<8x384xf32>
    %cst = arith.constant dense<0.000000e+00> : vector<8x384xf32>
    %9 = tpu.matmul %7, %8, %cst {dimension_numbers = #tpu.dot_dimension_numbers<[1], [0], [0], [1], [0, 0, 1, 1], [], []>} : vector<8x8xf32>, vector<8x384xf32>, vector<8x384xf32> -> vector<8x384xf32>
    %10 = vector.extract_strided_slice %5 {offsets = [1, 0, 0], sizes = [1, 8, 8], strides = [1, 1, 1]} : vector<9x8x8xf32> to vector<1x8x8xf32>
    %11 = vector.shape_cast %10 : vector<1x8x8xf32> to vector<8x8xf32>
    %12 = vector.extract_strided_slice %4 {offsets = [0, 1], sizes = [8, 384], strides = [1, 1]} : vector<8x768xf32> to vector<8x384xf32>
    %cst_8 = arith.constant dense<0.000000e+00> : vector<8x384xf32>
    %13 = tpu.matmul %11, %12, %cst_8 {dimension_numbers = #tpu.dot_dimension_numbers<[1], [0], [0], [1], [0, 0, 1, 1], [], []>} : vector<8x8xf32>, vector<8x384xf32>, vector<8x384xf32> -> vector<8x384xf32>
    %14 = arith.addf %9, %13 : vector<8x384xf32>
    %15 = vector.extract_strided_slice %5 {offsets = [2, 0, 0], sizes = [1, 8, 8], strides = [1, 1, 1]} : vector<9x8x8xf32> to vector<1x8x8xf32>
    %16 = vector.shape_cast %15 : vector<1x8x8xf32> to vector<8x8xf32>
    %17 = vector.extract_strided_slice %4 {offsets = [0, 2], sizes = [8, 384], strides = [1, 1]} : vector<8x768xf32> to vector<8x384xf32>
    %cst_9 = arith.constant dense<0.000000e+00> : vector<8x384xf32>
    %18 = tpu.matmul %16, %17, %cst_9 {dimension_numbers = #tpu.dot_dimension_numbers<[1], [0], [0], [1], [0, 0, 1, 1], [], []>} : vector<8x8xf32>, vector<8x384xf32>, vector<8x384xf32> -> vector<8x384xf32>
    %19 = arith.addf %14, %18 : vector<8x384xf32>
    %20 = vector.extract_strided_slice %5 {offsets = [3, 0, 0], sizes = [1, 8, 8], strides = [1, 1, 1]} : vector<9x8x8xf32> to vector<1x8x8xf32>
    %21 = vector.shape_cast %20 : vector<1x8x8xf32> to vector<8x8xf32>
    %22 = vector.extract_strided_slice %4 {offsets = [0, 48], sizes = [8, 384], strides = [1, 1]} : vector<8x768xf32> to vector<8x384xf32>
    %cst_10 = arith.constant dense<0.000000e+00> : vector<8x384xf32>
    %23 = tpu.matmul %21, %22, %cst_10 {dimension_numbers = #tpu.dot_dimension_numbers<[1], [0], [0], [1], [0, 0, 1, 1], [], []>} : vector<8x8xf32>, vector<8x384xf32>, vector<8x384xf32> -> vector<8x384xf32>
    %24 = arith.addf %19, %23 : vector<8x384xf32>
    %25 = vector.extract_strided_slice %5 {offsets = [4, 0, 0], sizes = [1, 8, 8], strides = [1, 1, 1]} : vector<9x8x8xf32> to vector<1x8x8xf32>
    %26 = vector.shape_cast %25 : vector<1x8x8xf32> to vector<8x8xf32>
    %27 = vector.extract_strided_slice %4 {offsets = [0, 49], sizes = [8, 384], strides = [1, 1]} : vector<8x768xf32> to vector<8x384xf32>
    %cst_11 = arith.constant dense<0.000000e+00> : vector<8x384xf32>
    %28 = tpu.matmul %26, %27, %cst_11 {dimension_numbers = #tpu.dot_dimension_numbers<[1], [0], [0], [1], [0, 0, 1, 1], [], []>} : vector<8x8xf32>, vector<8x384xf32>, vector<8x384xf32> -> vector<8x384xf32>
    %29 = arith.addf %24, %28 : vector<8x384xf32>
    %30 = vector.extract_strided_slice %5 {offsets = [5, 0, 0], sizes = [1, 8, 8], strides = [1, 1, 1]} : vector<9x8x8xf32> to vector<1x8x8xf32>
    %31 = vector.shape_cast %30 : vector<1x8x8xf32> to vector<8x8xf32>
    %32 = vector.extract_strided_slice %4 {offsets = [0, 50], sizes = [8, 384], strides = [1, 1]} : vector<8x768xf32> to vector<8x384xf32>
    %cst_12 = arith.constant dense<0.000000e+00> : vector<8x384xf32>
    %33 = tpu.matmul %31, %32, %cst_12 {dimension_numbers = #tpu.dot_dimension_numbers<[1], [0], [0], [1], [0, 0, 1, 1], [], []>} : vector<8x8xf32>, vector<8x384xf32>, vector<8x384xf32> -> vector<8x384xf32>
    %34 = arith.addf %29, %33 : vector<8x384xf32>
    %35 = vector.extract_strided_slice %5 {offsets = [6, 0, 0], sizes = [1, 8, 8], strides = [1, 1, 1]} : vector<9x8x8xf32> to vector<1x8x8xf32>
    %36 = vector.shape_cast %35 : vector<1x8x8xf32> to vector<8x8xf32>
    %37 = vector.extract_strided_slice %4 {offsets = [0, 96], sizes = [8, 384], strides = [1, 1]} : vector<8x768xf32> to vector<8x384xf32>
    %cst_13 = arith.constant dense<0.000000e+00> : vector<8x384xf32>
    %38 = tpu.matmul %36, %37, %cst_13 {dimension_numbers = #tpu.dot_dimension_numbers<[1], [0], [0], [1], [0, 0, 1, 1], [], []>} : vector<8x8xf32>, vector<8x384xf32>, vector<8x384xf32> -> vector<8x384xf32>
    %39 = arith.addf %34, %38 : vector<8x384xf32>
    %40 = vector.extract_strided_slice %5 {offsets = [7, 0, 0], sizes = [1, 8, 8], strides = [1, 1, 1]} : vector<9x8x8xf32> to vector<1x8x8xf32>
    %41 = vector.shape_cast %40 : vector<1x8x8xf32> to vector<8x8xf32>
    %42 = vector.extract_strided_slice %4 {offsets = [0, 97], sizes = [8, 384], strides = [1, 1]} : vector<8x768xf32> to vector<8x384xf32>
    %cst_14 = arith.constant dense<0.000000e+00> : vector<8x384xf32>
    %43 = tpu.matmul %41, %42, %cst_14 {dimension_numbers = #tpu.dot_dimension_numbers<[1], [0], [0], [1], [0, 0, 1, 1], [], []>} : vector<8x8xf32>, vector<8x384xf32>, vector<8x384xf32> -> vector<8x384xf32>
    %44 = arith.addf %39, %43 : vector<8x384xf32>
    %45 = vector.extract_strided_slice %5 {offsets = [8, 0, 0], sizes = [1, 8, 8], strides = [1, 1, 1]} : vector<9x8x8xf32> to vector<1x8x8xf32>
    %46 = vector.shape_cast %45 : vector<1x8x8xf32> to vector<8x8xf32>
    %47 = vector.extract_strided_slice %4 {offsets = [0, 98], sizes = [8, 384], strides = [1, 1]} : vector<8x768xf32> to vector<8x384xf32>
    %cst_15 = arith.constant dense<0.000000e+00> : vector<8x384xf32>
    %48 = tpu.matmul %46, %47, %cst_15 {dimension_numbers = #tpu.dot_dimension_numbers<[1], [0], [0], [1], [0, 0, 1, 1], [], []>} : vector<8x8xf32>, vector<8x384xf32>, vector<8x384xf32> -> vector<8x384xf32>
    %49 = arith.addf %44, %48 : vector<8x384xf32>
    %c0_16 = arith.constant 0 : index
    %c0_17 = arith.constant 0 : index
    %50 = vector.load %arg5[%c0_16, %c0_17] : memref<8x1xf32, #tpu.memory_space<vmem>>, vector<8x1xf32>
    %51 = vector.broadcast %50 : vector<8x1xf32> to vector<8x384xf32>
    %52 = arith.addf %49, %51 : vector<8x384xf32>
    %cst_18 = arith.constant 0.000000e+00 : f32
    %53 = vector.broadcast %cst_18 : f32 to vector<8x384xf32>
    %54 = arith.maximumf %52, %53 : vector<8x384xf32>
    %c0_19 = arith.constant 0 : index
    %c0_20 = arith.constant 0 : index
    %c0_21 = arith.constant 0 : index
    %55 = vector.load %arg6[%c0_19, %c0_20, %c0_21] : memref<1x8x384xf32, #tpu.memory_space<vmem>>, vector<1x8x384xf32>
    %56 = vector.shape_cast %55 : vector<1x8x384xf32> to vector<8x384xf32>
    %57 = vector.shape_cast %54 : vector<8x384xf32> to vector<1x8x384xf32>
    tpu.vector_store %arg6[%c0_19, %c0_20, %c0_21], %57 {strides = array<i32>} : memref<1x8x384xf32, #tpu.memory_space<vmem>>, vector<1x8x384xf32>,
    return
  }
  func.func @transform_0(%arg0: i32, %arg1: i32) -> (i32, i32, i32) {
    %c0_i32 = arith.constant 0 : i32
    %c0_i32_0 = arith.constant 0 : i32
    return %arg0, %c0_i32, %arg1 : i32, i32, i32
  }
  func.func @transform_1(%arg0: i32, %arg1: i32) -> (i32, i32, i32) {
    %c1_i32 = arith.constant 1 : i32
    %0 = arith.addi %arg1, %c1_i32 : i32
    %c0_i32 = arith.constant 0 : i32
    %c0_i32_0 = arith.constant 0 : i32
    return %arg0, %c0_i32, %0 : i32, i32, i32
  }
  func.func @transform_2(%arg0: i32, %arg1: i32) -> (i32, i32, i32) {
    %c0_i32 = arith.constant 0 : i32
    %c0_i32_0 = arith.constant 0 : i32
    %c0_i32_1 = arith.constant 0 : i32
    %c0_i32_2 = arith.constant 0 : i32
    return %c0_i32, %c0_i32_0, %c0_i32_1 : i32, i32, i32
  }
  func.func @transform_3(%arg0: i32, %arg1: i32) -> (i32, i32) {
    %c0_i32 = arith.constant 0 : i32
    %c0_i32_0 = arith.constant 0 : i32
    %c0_i32_1 = arith.constant 0 : i32
    return %c0_i32, %c0_i32_0 : i32, i32
  }
  func.func @transform_4(%arg0: i32, %arg1: i32) -> (i32, i32, i32) {
    %c0_i32 = arith.constant 0 : i32
    %c0_i32_0 = arith.constant 0 : i32
    return %arg0, %c0_i32, %arg1 : i32, i32, i32
  }
}

</mosaic_0001>

<bundles_post_ra>
// kernel: deconv2d_bn_relu.1
= control target key start
LH: loop header
LB: loop body
LE: loop exit
PB: predicated region body
PF: predicated region fallthrough
CT: control target
= control target key end

     0   :  { %s2095_s15 = smov 0   ;;  %s2097_s16 = smov 0   ;;  %s2294_s0 = inlined_call_operand.vmem [shape: f32[2,8,1920], index: 0, kind: input, shape index: {}, may-alias: {0,1}]   ;;  %s2295_s1 = inlined_call_operand.vmem [shape: f32[2,8,1920], index: 1, kind: input, shape index: {}, may-alias: {0,1}]   ;;  %s2296_s2 = inlined_call_operand.vmem [shape: f32[9,8,8], index: 2, kind: input, shape index: {}]   ;;  %s2297_s3 = inlined_call_operand.vmem [shape: f32[8,1], index: 3, kind: input, shape index: {}]   ;;  %s2298_s4 = inlined_call_operand.vmem [shape: f32[2,8,1536], index: 4, kind: output, shape index: {}]  }
   0x1   :  { %s2099_s17 = smov 0   ;;  %s2101_s18 = smov 0  }
   0x2   :  { %s2103_s19 = smov 0  }
   0x3 LB: > { %s23_s20 = sadd.s32 1, %s2049_s17  ;;  %s26_s21 = sadd.s32 1, %s2053_s18  ;;  %s2057_s19 = sphi %s2103_s19, %s14_s19   ;;  %s2053_s18 = sphi %s2101_s18, %s2302_s18   ;;  %s2049_s17 = sphi %s2099_s17, %s2301_s17   ;;  %s2045_s16 = sphi %s2097_s16, %s2300_s16   ;;  %s2041_s15 = sphi %s2095_s15, %s2299_s15  }
   0x4   : > { %p24_p0 = scmp.ge.s32.totalorder %s23_s20, 4  ;;  %p1862_p1 = scmp.ge.s32.totalorder %s2057_s19, 1 }
   0x5   : > { %p204_p2 = scmp.lt.s32.totalorder %s2057_s19, 9 }
   0x6   : > { %s2304_s20 = smov (%p24_p0, %s23_s20), 0  ;;  %s2306_s21 = smov (!%p24_p0, %s26_s21), %s2053_s18 }
   0x7   : > { %p205_p3 = pnand %p1862_p1, %p204_p2  ;;  %p28_p4 = scmp.ge.s32.totalorder %s2306_s21, 2 }
   0x8   : > { %s2125_s22 = smul.u32 (!%p205_p3), 3, %s2041_s15  ;;  %p249_p5 = scmp.lt.s32.totalorder (!%p205_p3), %s2045_s16, 1  ;;  %v2059_v0 = vmov (!%p205_p3), 0.0   ;;  %vm2062_vm0 = vmmov (!%p205_p3), 0   ;;  %v2069_v5 = vmov (!%p205_p3), 0   ;;  %v1735_v6 = vld [vmem:[%s2297_s3] sm:$0xff] (!%p205_p3) }
   0x9   : > { %s2308_s21 = smov (%p28_p4, %s2306_s21), 0  ;;  %208 = sbr.rel (%p205_p3) target bundleno = 428 (0x1ac), region = 36 }
   0xa   : > { %p251_p6 = scmp.lt.s32.totalorder (!%p205_p3), %s2125_s22, 14  ;;  %s258_s24 = sadd.s32 (!%p205_p3), 1, %s2041_s15  ;;  %380 = vmatprep.mubr.f32.mxu0 (!%p205_p3), %v2059_v0  ;;  %1904 = vmatprep.subr.mxu1 (!%p205_p3), %v2059_v0  ;;  %vm305_vm1 = vcmask (!%p205_p3), 1039360   ;;  %v285_v12 = vld [vmem:[%s2296_s2 + $0x8] sm:$0xff] (!%p205_p3)  ;;  %vm312_vm2 = vcmask (!%p205_p3), 64512   ;;  %vm609_vm3 = vcmask (!%p205_p3), 1031168  }
   0xb   : > { %s259_s26 = smul.u32 (!%p205_p3), 3, %s258_s24  ;;  %s2060_s6 = smov (!%p205_p3), 127   ;;  %1906 = vmatprep.mubr.msk.f32.mxu1 (!%p205_p3), %vm2062_vm0, %v2059_v0  ;;  %2018 = vset.pattern.permute.xlu0 (!%p205_p3), %v2069_v5  ;;  %vm771_vm4 = vcmask (!%p205_p3), 654336   ;;  %v284_v19 = vld [vmem:[%s2296_s2] sm:$0xff] (!%p205_p3)  ;;  %vm933_vm5 = vcmask (!%p205_p3), 646144   ;;  %v286_v27 = vld [vmem:[%s2296_s2 + $0x10] sm:$0xff] (!%p205_p3) }
   0xc   : > { %s2061_s7 = smov (!%p205_p3), 126   ;;  %s2063_s13 = smov (!%p205_p3), 80   ;;  %vm1095_vm6 = vcmask (!%p205_p3), 637952   ;;  %v287_v35 = vld [vmem:[%s2296_s2 + $0x18] sm:$0xff] (!%p205_p3)  ;;  %v288_v44 = vld [vmem:[%s2296_s2 + $0x20] sm:$0xff] (!%p205_p3)  ;;  %vm1257_vm7 = vcmask (!%p205_p3), 261120  }
   0xd   : > { %p262_p7 = scmp.lt.s32.totalorder (!%p205_p3), %s259_s26, 14  ;;  %s2064_s14 = smov (!%p205_p3), 79   ;;  %v289_v51 = vld [vmem:[%s2296_s2 + $0x28] sm:$0xff] (!%p205_p3)  ;;  %v290_v57 = vld [vmem:[%s2296_s2 + $0x30] sm:$0xff] (!%p205_p3)  ;;  %vm1419_vm8 = vcmask (!%p205_p3), 252928   ;;  %v291_v61 = vld [vmem:[%s2296_s2 + $0x38] sm:$0xff] (!%p205_p3) }
   0xe   : > { %s2065_s15 = smov (!%p205_p3), 78   ;;  %s2067_s24 = smov (!%p205_p3), 31   ;;  %vm1581_vm9 = vcmask (!%p205_p3), 244736  }
   0xf   : > { %p273_p8 = scmp.lt.s32.totalorder (!%p205_p3), %s2125_s22, 11 }
  0x10   : > { %s2310_s16 = smov (!%p249_p5, %s2045_s16), 1  ;;  %s2312_s26 = smov (!%p262_p7, %s259_s26), 14 }
  0x11   : > { %s1965_s23 = smul.u32 15, %s2310_s16 }
  0x12   : > { %s252_s25 = scalar_select %p251_p6, %s2125_s22, 14 }
  0x13   : > { %s265_s8 = sadd.s32 %s1965_s23, %s2312_s26  ;;  %s2314_s22 = smov (!%p273_p8, %s2125_s22), 11 }
  0x14   : > { %s254_s27 = sadd.s32 %s1965_s23, %s252_s25  ;;  %s1864_s9 = sshll.u32 %s265_s8, 3 }
  0x15   : > { %s1863_s28 = sshll.u32 %s254_s27, 3  ;;  %s267_s12 = scalar_lea.vmem %s2295_s1, %s1864_s9 }
  0x16   : > { %s256_s5 = scalar_lea.vmem %s2294_s0, %s1863_s28  ;;  %v283_v4 = vld [vmem:[%s267_s12] sm:$0xff]  ;;  %s2066_s23 = smov 32  }
  0x17   : > { %v2137_v1 = vld [vmem:[%s256_s5 + $0x8] sm:$0xff]  ;;  %v2139_v2 = vld [vmem:[%s256_s5] sm:$0xff]  ;;  %v2143_v3 = vld [vmem:[%s256_s5 + $0x10] sm:$0xff]  ;;  %s2068_s25 = smov 30   ;;  %s1966_s27 = smul.u32 12, %s2310_s16 }
  0x18   : > { %299 = vrot.lane.b32.xlu0 %v2137_v1, %s2060_s6  ;;  %297 = vrot.lane.b32.xlu1 %v2139_v2, %s2060_s6 }
  0x19   : > { %s276_s28 = sadd.s32 %s1966_s27, %s2314_s22 }
  0x1a   : > { %s1865_s29 = sshll.u32 %s276_s28, 3 }
  0x1c   : > { %301 = vrot.lane.b32.xlu0 %v2143_v3, %s2060_s6  ;;  %603 = vrot.lane.b32.xlu1 %v2137_v1, %s2061_s7 }
  0x20   : > { %605 = vrot.lane.b32.xlu0 %v2143_v3, %s2061_s7  ;;  %601 = vrot.lane.b32.xlu1 %v2139_v2, %s2061_s7 }
  0x24   : > { %765 = vrot.lane.b32.xlu0 %v2137_v1, %s2063_s13  ;;  %767 = vrot.lane.b32.xlu1 %v2143_v3, %s2063_s13 }
  0x28   : > { %763 = vrot.lane.b32.xlu0 %v2139_v2, %s2063_s13  ;;  %303 = vrot.lane.b32.xlu1 %v283_v4, %s2060_s6  ;;  %s278_s6 = scalar_lea.vmem %s2298_s4, %s1865_s29 }
  0x2c   : > { %927 = vrot.lane.b32.xlu0 %v2137_v1, %s2064_s14  ;;  %929 = vrot.lane.b32.xlu1 %v2143_v3, %s2064_s14 }
  0x30   : > { %925 = vrot.lane.b32.xlu0 %v2139_v2, %s2064_s14  ;;  %607 = vrot.lane.b32.xlu1 %v283_v4, %s2061_s7 }
  0x34   : > { %1089 = vrot.lane.b32.xlu0 %v2137_v1, %s2065_s15  ;;  %1091 = vrot.lane.b32.xlu1 %v2143_v3, %s2065_s15 }
  0x38   : > { %1087 = vrot.lane.b32.xlu0 %v2139_v2, %s2065_s15  ;;  %769 = vrot.lane.b32.xlu1 %v283_v4, %s2063_s13 }
  0x3c   : > { %931 = vrot.lane.b32.xlu0 %v283_v4, %s2064_s14  ;;  %1251 = vrot.lane.b32.xlu1 %v2137_v1, %s2066_s23 }
  0x40   : > { %1253 = vrot.lane.b32.xlu0 %v2143_v3, %s2066_s23  ;;  %1249 = vrot.lane.b32.xlu1 %v2139_v2, %s2066_s23 }
  0x44   : > { %1093 = vrot.lane.b32.xlu0 %v283_v4, %s2065_s15  ;;  %1255 = vrot.lane.b32.xlu1 %v283_v4, %s2066_s23 }
  0x48   : > { %1413 = vrot.lane.b32.xlu0 %v2137_v1, %s2067_s24  ;;  %1415 = vrot.lane.b32.xlu1 %v2143_v3, %s2067_s24 }
  0x4c   : > { %1411 = vrot.lane.b32.xlu0 %v2139_v2, %s2067_s24  ;;  %1417 = vrot.lane.b32.xlu1 %v283_v4, %s2067_s24 }
  0x50   : > { %1575 = vrot.lane.b32.xlu0 %v2137_v1, %s2068_s25  ;;  %1577 = vrot.lane.b32.xlu1 %v2143_v3, %s2068_s25 }
  0x54   : > { %1579 = vrot.lane.b32.xlu0 %v283_v4, %s2068_s25  ;;  %1573 = vrot.lane.b32.xlu1 %v2139_v2, %s2068_s25 }
  0x58   : > { %1738 = vperm.xlu0 %2018, %v1735_v6   ;;  %v292_v6 = vld [vmem:[%s2296_s2 + $0x40] sm:$0xff] }
  0x8a   : > { %v300_v7 = vpop.permute.xlu0 %299  ;;  %v298_v8 = vpop.permute.xlu1 %297 }
  0x8b   : > { %v306_v13 = vsel %vm305_vm1, %v298_v8, %v300_v7 }
  0x8e   : > { %v302_v9 = vpop.permute.xlu0 %301  ;;  %v604_v10 = vpop.permute.xlu1 %603 }
  0x8f   : > { %v307_v11 = vsel %vm305_vm1, %v300_v7, %v302_v9 }
  0x90   : > { %316 = vmatprep.subr.mxu0 %v307_v11 }
  0x91   : > { %317 = vmatpush1.msra.mxu0 %v306_v13 }
  0x92   : > { %v606_v14 = vpop.permute.xlu0 %605  ;;  %1866 = vmatmul.mubr.msk.f32.vlgmr.msra.gmra.mrb[0].mxu0 %vm312_vm2, %v285_v12  ;;  %460 = vmatprep.subr.mxu0 %v2137_v1  ;;  %v602_v15 = vpop.permute.xlu1 %601 }
  0x93   : > { %461 = vmatpush1.msra.mxu0 %v2139_v2  ;;  %v611_v16 = vsel %vm609_vm3, %v604_v10, %v606_v14  ;;  %524 = vmatprep.mubr.f32.mxu0 %v2059_v0  ;;  %v610_v20 = vsel %vm609_vm3, %v602_v15, %v604_v10 }
  0x94   : > { %619 = vmatprep.subr.mxu0 %v611_v16 }
  0x96   : > { %v766_v17 = vpop.permute.xlu0 %765  ;;  %v768_v18 = vpop.permute.xlu1 %767 }
  0x97   : > { %v773_v21 = vsel %vm771_vm4, %v766_v17, %v768_v18 }
  0x9a   : > { %v764_v22 = vpop.permute.xlu0 %763  ;;  %1868 = vmatmul.mubr.msk.f32.vlgmr.msra.gmra.mrb[0].mxu0 %vm312_vm2, %v284_v19  ;;  %v304_v23 = vpop.permute.xlu1 %303 }
  0x9b   : > { %620 = vmatpush1.msra.mxu0 %v610_v20  ;;  %v308_v24 = vsel %vm305_vm1, %v302_v9, %v304_v23  ;;  %683 = vmatprep.mubr.f32.mxu0 %v2059_v0  ;;  %v772_v29 = vsel %vm771_vm4, %v764_v22, %v766_v17 }
  0x9c   : > { %781 = vmatprep.subr.mxu0 %v773_v21  ;;  %1905 = vmatpush3.msra.mxu1 %v308_v24 }
  0x9d   : > { %1907 = vmatmul.mubr.msk.f32.vlgmr.msra.gmra.mrb[0].mxu1 %vm312_vm2, %v285_v12  ;;  %1909 = vmatprep.subr.mxu1 %v2059_v0 }
  0x9e   : > { %v928_v25 = vpop.permute.xlu0 %927  ;;  %v930_v26 = vpop.permute.xlu1 %929  ;;  %1910 = vmatpush3.msra.mxu1 %v2143_v3  ;;  %1911 = vmatprep.mubr.msk.f32.mxu1 %vm2062_vm0, %v2059_v0 }
  0x9f   : > { %1914 = vmatprep.subr.mxu1 %v2059_v0  ;;  %v935_v28 = vsel %vm933_vm5, %v928_v25, %v930_v26 }
  0xa1   : > { %1912 = vmatmul.mubr.msk.f32.vlgmr.msra.gmra.mrb[2].mxu1 %vm312_vm2, %v284_v19 }
  0xa2   : > { %v926_v30 = vpop.permute.xlu0 %925  ;;  %1870 = vmatmul.mubr.msk.f32.vlgmr.msra.gmra.mrb[0].mxu0 %vm312_vm2, %v286_v27  ;;  %v608_v31 = vpop.permute.xlu1 %607  ;;  %1916 = vmatprep.mubr.msk.f32.mxu1 %vm2062_vm0, %v2059_v0 }
  0xa3   : > { %782 = vmatpush1.msra.mxu0 %v772_v29  ;;  %v612_v32 = vsel %vm609_vm3, %v606_v14, %v608_v31  ;;  %845 = vmatprep.mubr.f32.mxu0 %v2059_v0  ;;  %v934_v37 = vsel %vm933_vm5, %v926_v30, %v928_v25 }
  0xa4   : > { %943 = vmatprep.subr.mxu0 %v935_v28  ;;  %1915 = vmatpush3.msra.mxu1 %v612_v32 }
  0xa5   : > { %1919 = vmatprep.subr.mxu1 %v2059_v0  ;;  %1917 = vmatmul.mubr.msk.f32.vlgmr.msra.gmra.mrb[4].mxu1 %vm312_vm2, %v286_v27 }
  0xa6   : > { %v1090_v33 = vpop.permute.xlu0 %1089  ;;  %v1092_v34 = vpop.permute.xlu1 %1091  ;;  %1921 = vmatprep.mubr.msk.f32.mxu1 %vm2062_vm0, %v2059_v0 }
  0xa7   : > { %v1097_v36 = vsel %vm1095_vm6, %v1090_v33, %v1092_v34 }
  0xaa   : > { %v1088_v38 = vpop.permute.xlu0 %1087  ;;  %1872 = vmatmul.mubr.msk.f32.vlgmr.msra.gmra.mrb[0].mxu0 %vm312_vm2, %v287_v35  ;;  %v770_v39 = vpop.permute.xlu1 %769 }
  0xab   : > { %944 = vmatpush1.msra.mxu0 %v934_v37  ;;  %v774_v40 = vsel %vm771_vm4, %v768_v18, %v770_v39  ;;  %1007 = vmatprep.mubr.f32.mxu0 %v2059_v0  ;;  %v1096_v45 = vsel %vm1095_vm6, %v1088_v38, %v1090_v33 }
  0xac   : > { %1105 = vmatprep.subr.mxu0 %v1097_v36  ;;  %1920 = vmatpush3.msra.mxu1 %v774_v40 }
  0xad   : > { %1924 = vmatprep.subr.mxu1 %v2059_v0  ;;  %1922 = vmatmul.mubr.msk.f32.vlgmr.msra.gmra.mrb[6].mxu1 %vm312_vm2, %v287_v35 }
  0xae   : > { %v932_v41 = vpop.permute.xlu0 %931  ;;  %v1252_v42 = vpop.permute.xlu1 %1251  ;;  %1926 = vmatprep.mubr.msk.f32.mxu1 %vm2062_vm0, %v2059_v0 }
  0xaf   : > { %v936_v43 = vsel %vm933_vm5, %v930_v26, %v932_v41 }
  0xb0   : > { %1925 = vmatpush3.msra.mxu1 %v936_v43 }
  0xb1   : > { %1927 = vmatmul.mubr.msk.f32.vlgmr.msra.gmra.mrb[8].mxu1 %vm312_vm2, %v288_v44  ;;  %1929 = vmatprep.subr.mxu1 %v2059_v0 }
  0xb2   : > { %v1254_v46 = vpop.permute.xlu0 %1253  ;;  %1874 = vmatmul.mubr.msk.f32.vlgmr.msra.gmra.mrb[0].mxu0 %vm312_vm2, %v288_v44  ;;  %v1250_v47 = vpop.permute.xlu1 %1249  ;;  %1931 = vmatprep.mubr.msk.f32.mxu1 %vm2062_vm0, %v2059_v0 }
  0xb3   : > { %1106 = vmatpush1.msra.mxu0 %v1096_v45  ;;  %v1259_v48 = vsel %vm1257_vm7, %v1252_v42, %v1254_v46  ;;  %1169 = vmatprep.mubr.f32.mxu0 %v2059_v0  ;;  %v1258_v54 = vsel %vm1257_vm7, %v1250_v47, %v1252_v42 }
  0xb4   : > { %1267 = vmatprep.subr.mxu0 %v1259_v48 }
  0xb6   : > { %v1094_v49 = vpop.permute.xlu0 %1093  ;;  %v1256_v50 = vpop.permute.xlu1 %1255 }
  0xb7   : > { %v1098_v52 = vsel %vm1095_vm6, %v1092_v34, %v1094_v49  ;;  %v1260_v53 = vsel %vm1257_vm7, %v1254_v46, %v1256_v50 }
  0xb8   : > { %1930 = vmatpush3.msra.mxu1 %v1098_v52 }
  0xb9   : > { %1932 = vmatmul.mubr.msk.f32.vlgmr.msra.gmra.mrb[10].mxu1 %vm312_vm2, %v289_v51  ;;  %1934 = vmatprep.subr.mxu1 %v2059_v0 }
  0xba   : > { %v1414_v55 = vpop.permute.xlu0 %1413  ;;  %1876 = vmatmul.mubr.msk.f32.vlgmr.msra.gmra.mrb[0].mxu0 %vm312_vm2, %v289_v51  ;;  %1935 = vmatpush3.msra.mxu1 %v1260_v53  ;;  %v1416_v56 = vpop.permute.xlu1 %1415 }
  0xbb   : > { %1268 = vmatpush1.msra.mxu0 %v1258_v54  ;;  %1936 = vmatprep.mubr.msk.f32.mxu1 %vm2062_vm0, %v2059_v0  ;;  %v1421_v58 = vsel %vm1419_vm8, %v1414_v55, %v1416_v56 }
  0xbc   : > { %1429 = vmatprep.subr.mxu0 %v1421_v58  ;;  %1939 = vmatprep.subr.mxu1 %v2059_v0 }
  0xbd   : > { %1937 = vmatmul.mubr.msk.f32.vlgmr.msra.gmra.mrb[12].mxu1 %vm312_vm2, %v290_v57  ;;  %1331 = vmatprep.mubr.f32.mxu0 %v2059_v0 }
  0xbe   : > { %v1412_v59 = vpop.permute.xlu0 %1411  ;;  %v1418_v60 = vpop.permute.xlu1 %1417  ;;  %1941 = vmatprep.mubr.msk.f32.mxu1 %vm2062_vm0, %v2059_v0 }
  0xbf   : > { %v1422_v62 = vsel %vm1419_vm8, %v1416_v56, %v1418_v60  ;;  %v1420_v63 = vsel %vm1419_vm8, %v1412_v59, %v1414_v55 }
  0xc0   : > { %1940 = vmatpush3.msra.mxu1 %v1422_v62 }
  0xc1   : > { %1942 = vmatmul.mubr.msk.f32.vlgmr.msra.gmra.mrb[14].mxu1 %vm312_vm2, %v291_v61  ;;  %1944 = vmatprep.subr.mxu1 %v2059_v0 }
  0xc2   : > { %v1576_v1 = vpop.permute.xlu0 %1575  ;;  %1878 = vmatmul.mubr.msk.f32.vlgmr.msra.gmra.mrb[0].mxu0 %vm312_vm2, %v290_v57  ;;  %v1578_v2 = vpop.permute.xlu1 %1577  ;;  %1946 = vmatprep.mubr.msk.f32.mxu1 %vm2062_vm0, %v2059_v0 }
  0xc3   : > { %1430 = vmatpush1.msra.mxu0 %v1420_v63  ;;  %v1583_v3 = vsel %vm1581_vm9, %v1576_v1, %v1578_v2  ;;  %1493 = vmatprep.mubr.f32.mxu0 %v2059_v0 }
  0xc4   : > { %1591 = vmatprep.subr.mxu0 %v1583_v3 }
  0xc6   : > { %v1580_v4 = vpop.permute.xlu0 %1579  ;;  %v1574_v5 = vpop.permute.xlu1 %1573 }
  0xc7   : > { %v1584_v7 = vsel %vm1581_vm9, %v1578_v2, %v1580_v4  ;;  %v1582_v8 = vsel %vm1581_vm9, %v1574_v5, %v1576_v1 }
  0xc8   : > { %1945 = vmatpush3.msra.mxu1 %v1584_v7 }
  0xc9   : > { %1947 = vmatmul.mubr.msk.f32.vlgmr.msra.gmra.mrb[16].mxu1 %vm312_vm2, %v292_v6 }
  0xca   : > { %1880 = vmatmul.mubr.msk.f32.vlgmr.msra.gmra.mrb[0].mxu0 %vm312_vm2, %v291_v61 }
  0xcb   : > { %1592 = vmatpush1.msra.mxu0 %v1582_v8  ;;  %1655 = vmatprep.mubr.f32.mxu0 %v2059_v0 }
  0xd2   : > { %1882 = vmatmul.mubr.msk.f32.vlgmr.msra.gmra.mrb[0].mxu0 %vm312_vm2, %v292_v6 }
  0xd7   : > { %v1739_v32 = vpop.permute.xlu0 %1738 }
 0x170   : > { %v453_v9 = vpop.f32.mrb[0].mxu1 }
 0x171   : > { %v1908_v10 = vpop.f32.mrb[1].mxu1 }
 0x174   : > { %v597_v11 = vpop.f32.mrb[2].mxu1 }
 0x175   : > { %v598_v12 = vadd.f32 %v597_v11, %v453_v9  ;;  %v1913_v13 = vpop.f32.mrb[3].mxu1 }
 0x178   : > { %v756_v14 = vpop.f32.mrb[4].mxu1 }
 0x179   : > { %v762_v15 = vadd.f32 %v756_v14, %v598_v12  ;;  %v1918_v16 = vpop.f32.mrb[5].mxu1 }
 0x180   : > { %v918_v17 = vpop.f32.mrb[6].mxu1 }
 0x181   : > { %v924_v18 = vadd.f32 %v918_v17, %v762_v15  ;;  %v1923_v19 = vpop.f32.mrb[7].mxu1 }
 0x184   : > { %v1080_v20 = vpop.f32.mrb[8].mxu1 }
 0x185   : > { %v1086_v21 = vadd.f32 %v1080_v20, %v924_v18  ;;  %v1928_v22 = vpop.f32.mrb[9].mxu1 }
 0x18c   : > { %v1242_v0 = vpop.f32.mrb[10].mxu1 }
 0x18d   : > { %v1248_v23 = vadd.f32 %v1242_v0, %v1086_v21  ;;  %v1933_v24 = vpop.f32.mrb[11].mxu1 }
 0x190   : > { %v1404_v25 = vpop.f32.mrb[12].mxu1 }
 0x191   : > { %v1410_v26 = vadd.f32 %v1404_v25, %v1248_v23  ;;  %v1938_v27 = vpop.f32.mrb[13].mxu1 }
 0x194   : > { %v1566_v28 = vpop.f32.mrb[14].mxu1 }
 0x195   : > { %v1572_v29 = vadd.f32 %v1566_v28, %v1410_v26  ;;  %v1943_v30 = vpop.f32.mrb[15].mxu1 }
 0x19c   : > { %v1728_v31 = vpop.f32.mrb[16].mxu1 }
 0x19d   : > { %v1734_v33 = vadd.f32 %v1728_v31, %v1572_v29  ;;  %v1948_v34 = vpop.f32.mrb[17].mxu1 }
 0x19f   : > { %v1743_v35 = vadd.f32 %v1739_v32, %v1734_v33 }
 0x1a1   : > { %v1746_v36 = vmax.f32 %v1743_v35, 0.0 }
 0x1a3   : > { %1749 = vst [vmem:[%s278_s6 + $0x10] sm:$0xff] %v1746_v36 }
 0x1a5   : > { %v1657_v37 = vpop.f32.mrb[0].mxu0 }
 0x1a6   : > { %v1741_v38 = vadd.f32 %v1739_v32, %v1657_v37  ;;  %v1659_v39 = vpop.f32.mrb[1].mxu0 }
 0x1a7   : > { %v1742_v40 = vadd.f32 %v1739_v32, %v1659_v39 }
 0x1a8   : > { %v1744_v41 = vmax.f32 %v1741_v38, 0.0 }
 0x1a9   : > { %v1745_v42 = vmax.f32 %v1742_v40, 0.0 }
 0x1aa   : > { %1747 = vst [vmem:[%s278_s6] sm:$0xff] %v1744_v41 }
 0x1ab   : > { %1748 = vst [vmem:[%s278_s6 + $0x8] sm:$0xff] %v1745_v42 }
 0x1ac PF: > { %s14_s19 = sadd.s32 1, %s2057_s19   ;;  %s2299_s15 = smov %s2049_s17 }
 0x1ad   : > { %p11_p9 = scmp.ge.s32.totalorder %s14_s19, 10   ;;  %s2300_s16 = smov %s2053_s18 }
 0x1ae   : > { %s2301_s17 = smov %s2304_s20  ;;  %s2302_s18 = smov %s2308_s21 }
 0x1af   :  { %13 = sbr.rel (!%p11_p9) target bundleno = 3 (0x3), region = 69 }

</bundles_post_ra>
